<compile_context>
chip_gen: v7x
topology: tpu7x:2x2x1
jax: 0.10.0
libtpu: 0.0.40
codegen_flags: <defaults>
</compile_context>

<pallas_src>
import functools

import jax
import jax.numpy as jnp
from jax.experimental import pallas as pl
from jax.experimental.pallas import tpu as pltpu


def _basic_block_kernel(x_ref, m1_ref, b1_ref, m2_ref, b2_ref, o_ref,
                        xpad_ref, ypad_ref):
    # x_ref  : (1, H, W*C)   lane-dense input (also the residual)   (VMEM)
    # m1_ref : (3, W*C, W*C) banded conv1 weights, BN1 scale folded (VMEM)
    # b1_ref : (1, W*C)      BN1 bias tiled over W                  (VMEM)
    # m2_ref : (3, W*C, W*C) banded conv2 weights, BN2 scale folded (VMEM)
    # b2_ref : (1, W*C)      BN2 bias tiled over W                  (VMEM)
    # o_ref  : (1, H, W*C)   lane-dense output                      (VMEM)
    # xpad_ref, ypad_ref : (H+2, W*C) f32 scratch (H-padded activations)
    _, H, WC = x_ref.shape

    # Zero only the 2 border rows of each scratch (interior fully overwritten).
    zero_row = jnp.zeros((1, WC), jnp.float32)
    xpad_ref[0:1, :] = zero_row
    xpad_ref[H + 1:H + 2, :] = zero_row
    ypad_ref[0:1, :] = zero_row
    ypad_ref[H + 1:H + 2, :] = zero_row

    x = x_ref[0]                      # (H, W*C); reused as the residual
    xpad_ref[1:H + 1, :] = x

    # ---- conv1 (BN1 scale folded into weights) + bias + ReLU ----
    y = b1_ref[...]                   # (1, W*C) broadcast init (bias)
    y = y + jnp.dot(xpad_ref[0:H, :], m1_ref[0],
                    preferred_element_type=jnp.float32)
    y = y + jnp.dot(xpad_ref[1:H + 1, :], m1_ref[1],
                    preferred_element_type=jnp.float32)
    y = y + jnp.dot(xpad_ref[2:H + 2, :], m1_ref[2],
                    preferred_element_type=jnp.float32)
    y = jnp.maximum(y, 0.0)           # (H, W*C)
    ypad_ref[1:H + 1, :] = y

    # ---- conv2 (BN2 scale folded) + bias + residual + ReLU ----
    z = b2_ref[...] + x               # bias + residual init
    z = z + jnp.dot(ypad_ref[0:H, :], m2_ref[0],
                    preferred_element_type=jnp.float32)
    z = z + jnp.dot(ypad_ref[1:H + 1, :], m2_ref[1],
                    preferred_element_type=jnp.float32)
    z = z + jnp.dot(ypad_ref[2:H + 2, :], m2_ref[2],
                    preferred_element_type=jnp.float32)
    o_ref[0] = jnp.maximum(z, 0.0).astype(o_ref.dtype)


def _build_band_weights(w_hwio, scale, W):
    """Fold BN scale into conv weights and turn the 3 horizontal taps +
    channel mixing into banded (W*C, W*C) matrices, one per vertical tap.

    M[dy][w_in*C + ci, w_out*C + co] = scale[co] * w[dy, dx, ci, co]
      where dx = w_in - w_out + 1, and zero outside the band / image.
    """
    C = w_hwio.shape[2]
    ws = (w_hwio.astype(jnp.float32) *
          scale.astype(jnp.float32)[None, None, None, :])
    mats = []
    for dy in range(3):
        M = jnp.zeros((W * C, W * C), jnp.float32)
        for dx in range(3):
            # placement: out col w_out receives input row w_in = w_out + dx - 1
            P = jnp.eye(W, k=1 - dx, dtype=jnp.float32)
            M = M + jnp.kron(P, ws[dy, dx])
        mats.append(M)
    return jnp.stack(mats, axis=0)    # (3, W*C, W*C)


@functools.partial(jax.jit, static_argnames=())
def basic_block_pallas(x_nchw, w1, s1, b1, w2, s2, b2):
    """x_nchw: (N, C, H, W) float32.  Returns (N, C, H, W) float32."""
    N, C, H, W = x_nchw.shape
    WC = W * C

    # NCHW -> NHWC -> lane-dense (N, H, W*C)
    x = jnp.transpose(x_nchw, (0, 2, 3, 1)).astype(jnp.float32)
    x_flat = x.reshape(N, H, WC)

    # Banded weights with BN scale folded; biases tiled over W.
    M1 = _build_band_weights(w1, s1, W)
    M2 = _build_band_weights(w2, s2, W)
    b1t = jnp.tile(b1.astype(jnp.float32), W).reshape(1, WC)
    b2t = jnp.tile(b2.astype(jnp.float32), W).reshape(1, WC)

    out_flat = pl.pallas_call(
        _basic_block_kernel,
        out_shape=jax.ShapeDtypeStruct((N, H, WC), jnp.float32),
        grid_spec=pltpu.PrefetchScalarGridSpec(
            num_scalar_prefetch=0,
            grid=(N,),
            in_specs=[
                pl.BlockSpec((1, H, WC), lambda n: (n, 0, 0)),
                pl.BlockSpec((3, WC, WC), lambda n: (0, 0, 0)),
                pl.BlockSpec((1, WC), lambda n: (0, 0)),
                pl.BlockSpec((3, WC, WC), lambda n: (0, 0, 0)),
                pl.BlockSpec((1, WC), lambda n: (0, 0)),
            ],
            out_specs=pl.BlockSpec((1, H, WC), lambda n: (n, 0, 0)),
            scratch_shapes=[pltpu.VMEM((H + 2, WC), jnp.float32),
                            pltpu.VMEM((H + 2, WC), jnp.float32)],
        ),
        compiler_params=pltpu.CompilerParams(
            dimension_semantics=("parallel",)),
    )(x_flat, M1, b1t, M2, b2t)

    # (N, H, W*C) -> NHWC -> NCHW
    return jnp.transpose(out_flat.reshape(N, H, W, C), (0, 3, 1, 2))


def _reference(x_nchw, w1, s1, b1, w2, s2, b2):
    """Pure-JAX reference (NHWC conv) for a sanity check."""
    x = jnp.transpose(x_nchw, (0, 2, 3, 1))

    def conv(inp, w):
        return jax.lax.conv_general_dilated(
            inp, w, window_strides=(1, 1), padding=((1, 1), (1, 1)),
            dimension_numbers=("NHWC", "HWIO", "NHWC"))

    y = jnp.maximum(conv(x, w1) * s1 + b1, 0.0)
    z = conv(y, w2) * s2 + b2
    out = jnp.maximum(z + x, 0.0)
    return jnp.transpose(out, (0, 3, 1, 2))


if __name__ == "__main__":
    # Small shapes consistent with the module: inplanes == planes so that
    # downsample=None / stride=1 (the defaults) are valid.  W*C = 128 so the
    # lane axis is fully dense.
    N, C, H, W = 2, 8, 16, 16

    key = jax.random.PRNGKey(0)
    kx, kw1, kw2 = jax.random.split(key, 3)

    x = jax.random.normal(kx, (N, C, H, W), dtype=jnp.float32)

    # conv weights, deterministic.  Kernel layout: HWIO (3, 3, C_in, C_out).
    w1 = 0.1 * jax.random.normal(kw1, (3, 3, C, C), dtype=jnp.float32)
    w2 = 0.1 * jax.random.normal(kw2, (3, 3, C, C), dtype=jnp.float32)

    # BatchNorm (inference semantics), deterministic non-trivial params,
    # folded to per-channel scale / bias.
    eps = 1e-5
    cidx = jnp.arange(C, dtype=jnp.float32)
    gamma1 = 1.0 + 0.10 * cidx
    beta1 = 0.05 * cidx
    mean1 = 0.01 * cidx
    var1 = 1.0 + 0.02 * cidx
    gamma2 = 1.0 - 0.05 * cidx / C
    beta2 = -0.03 * cidx
    mean2 = 0.02 * cidx
    var2 = 1.0 + 0.01 * cidx

    s1 = gamma1 / jnp.sqrt(var1 + eps)
    b1 = beta1 - mean1 * s1
    s2 = gamma2 / jnp.sqrt(var2 + eps)
    b2 = beta2 - mean2 * s2

    out = basic_block_pallas(x, w1, s1, b1, w2, s2, b2)
    out = jax.block_until_ready(out)

    ref = _reference(x, w1, s1, b1, w2, s2, b2)
    assert out.shape == (N, C, H, W)
    assert jnp.allclose(out, ref, rtol=1e-3, atol=1e-3), \
        f"max abs err {jnp.max(jnp.abs(out - ref))}"

    print("KERNEL_OK")
</pallas_src>

<mosaic_0001>
module attributes {stable_mosaic.version = 11 : i64} {
  func.func @_basic_block_kernel(%arg0: i32, %arg1: memref<1x16x128xf32, #tpu.memory_space<vmem>>, %arg2: memref<3x128x128xf32, #tpu.memory_space<vmem>>, %arg3: memref<1x128xf32, #tpu.memory_space<vmem>>, %arg4: memref<3x128x128xf32, #tpu.memory_space<vmem>>, %arg5: memref<1x128xf32, #tpu.memory_space<vmem>>, %arg6: memref<1x16x128xf32, #tpu.memory_space<vmem>>, %arg7: memref<18x128xf32, #tpu.memory_space<vmem>>, %arg8: memref<18x128xf32, #tpu.memory_space<vmem>>) attributes {dimension_semantics = [#tpu.dimension_semantics<parallel>], iteration_bounds = array<i64: 2>, scalar_prefetch = 0 : i64, scratch_operands = 2 : i64, tpu.core_type = #tpu.core_type<tc>, window_params = [{transform_indices = @transform_0, window_bounds = array<i64: 1, 16, 128>}, {pipeline_mode = #tpu.pipeline_mode<synchronous>, transform_indices = @transform_1, window_bounds = array<i64: 3, 128, 128>}, {pipeline_mode = #tpu.pipeline_mode<synchronous>, transform_indices = @transform_2, window_bounds = array<i64: 1, 128>}, {pipeline_mode = #tpu.pipeline_mode<synchronous>, transform_indices = @transform_3, window_bounds = array<i64: 3, 128, 128>}, {pipeline_mode = #tpu.pipeline_mode<synchronous>, transform_indices = @transform_4, window_bounds = array<i64: 1, 128>}, {transform_indices = @transform_5, window_bounds = array<i64: 1, 16, 128>}]} {
    %cst = arith.constant 0.000000e+00 : f32
    %0 = vector.broadcast %cst : f32 to vector<1x128xf32>
    %c0 = arith.constant 0 : index
    %c0_0 = arith.constant 0 : index
    %1 = vector.load %arg7[%c0, %c0_0] : memref<18x128xf32, #tpu.memory_space<vmem>>, vector<1x128xf32>
    tpu.vector_store %arg7[%c0, %c0_0], %0 {strides = array<i32>} : memref<18x128xf32, #tpu.memory_space<vmem>>, vector<1x128xf32>,
    %c17 = arith.constant 17 : index
    %c0_1 = arith.constant 0 : index
    %2 = vector.load %arg7[%c17, %c0_1] : memref<18x128xf32, #tpu.memory_space<vmem>>, vector<1x128xf32>
    tpu.vector_store %arg7[%c17, %c0_1], %0 {strides = array<i32>} : memref<18x128xf32, #tpu.memory_space<vmem>>, vector<1x128xf32>,
    %c0_2 = arith.constant 0 : index
    %c0_3 = arith.constant 0 : index
    %3 = vector.load %arg8[%c0_2, %c0_3] : memref<18x128xf32, #tpu.memory_space<vmem>>, vector<1x128xf32>
    tpu.vector_store %arg8[%c0_2, %c0_3], %0 {strides = array<i32>} : memref<18x128xf32, #tpu.memory_space<vmem>>, vector<1x128xf32>,
    %c17_4 = arith.constant 17 : index
    %c0_5 = arith.constant 0 : index
    %4 = vector.load %arg8[%c17_4, %c0_5] : memref<18x128xf32, #tpu.memory_space<vmem>>, vector<1x128xf32>
    tpu.vector_store %arg8[%c17_4, %c0_5], %0 {strides = array<i32>} : memref<18x128xf32, #tpu.memory_space<vmem>>, vector<1x128xf32>,
    %c0_6 = arith.constant 0 : index
    %c0_7 = arith.constant 0 : index
    %c0_8 = arith.constant 0 : index
    %5 = vector.load %arg1[%c0_6, %c0_7, %c0_8] : memref<1x16x128xf32, #tpu.memory_space<vmem>>, vector<1x16x128xf32>
    %6 = vector.shape_cast %5 : vector<1x16x128xf32> to vector<16x128xf32>
    %c1 = arith.constant 1 : index
    %c0_9 = arith.constant 0 : index
    %7 = vector.load %arg7[%c1, %c0_9] : memref<18x128xf32, #tpu.memory_space<vmem>>, vector<16x128xf32>
    tpu.vector_store %arg7[%c1, %c0_9], %6 {strides = array<i32>} : memref<18x128xf32, #tpu.memory_space<vmem>>, vector<16x128xf32>,
    %c0_10 = arith.constant 0 : index
    %c0_11 = arith.constant 0 : index
    %8 = vector.load %arg3[%c0_10, %c0_11] : memref<1x128xf32, #tpu.memory_space<vmem>>, vector<1x128xf32>
    %c0_12 = arith.constant 0 : index
    %c0_13 = arith.constant 0 : index
    %9 = vector.load %arg7[%c0_12, %c0_13] : memref<18x128xf32, #tpu.memory_space<vmem>>, vector<16x128xf32>
    %c0_14 = arith.constant 0 : index
    %c0_15 = arith.constant 0 : index
    %c0_16 = arith.constant 0 : index
    %10 = vector.load %arg2[%c0_14, %c0_15, %c0_16] : memref<3x128x128xf32, #tpu.memory_space<vmem>>, vector<1x128x128xf32>
    %11 = vector.shape_cast %10 : vector<1x128x128xf32> to vector<128x128xf32>
    %cst_17 = arith.constant dense<0.000000e+00> : vector<16x128xf32>
    %12 = tpu.matmul %9, %11, %cst_17 {dimension_numbers = #tpu.dot_dimension_numbers<[1], [0], [0], [1], [0, 0, 1, 1], [], []>} : vector<16x128xf32>, vector<128x128xf32>, vector<16x128xf32> -> vector<16x128xf32>
    %13 = vector.broadcast %8 : vector<1x128xf32> to vector<16x128xf32>
    %14 = arith.addf %13, %12 : vector<16x128xf32>
    %c1_18 = arith.constant 1 : index
    %c0_19 = arith.constant 0 : index
    %15 = vector.load %arg7[%c1_18, %c0_19] : memref<18x128xf32, #tpu.memory_space<vmem>>, vector<16x128xf32>
    %c1_20 = arith.constant 1 : index
    %c0_21 = arith.constant 0 : index
    %c0_22 = arith.constant 0 : index
    %16 = vector.load %arg2[%c1_20, %c0_21, %c0_22] : memref<3x128x128xf32, #tpu.memory_space<vmem>>, vector<1x128x128xf32>
    %17 = vector.shape_cast %16 : vector<1x128x128xf32> to vector<128x128xf32>
    %cst_23 = arith.constant dense<0.000000e+00> : vector<16x128xf32>
    %18 = tpu.matmul %15, %17, %cst_23 {dimension_numbers = #tpu.dot_dimension_numbers<[1], [0], [0], [1], [0, 0, 1, 1], [], []>} : vector<16x128xf32>, vector<128x128xf32>, vector<16x128xf32> -> vector<16x128xf32>
    %19 = arith.addf %14, %18 : vector<16x128xf32>
    %c2 = arith.constant 2 : index
    %c0_24 = arith.constant 0 : index
    %20 = vector.load %arg7[%c2, %c0_24] : memref<18x128xf32, #tpu.memory_space<vmem>>, vector<16x128xf32>
    %c2_25 = arith.constant 2 : index
    %c0_26 = arith.constant 0 : index
    %c0_27 = arith.constant 0 : index
    %21 = vector.load %arg2[%c2_25, %c0_26, %c0_27] : memref<3x128x128xf32, #tpu.memory_space<vmem>>, vector<1x128x128xf32>
    %22 = vector.shape_cast %21 : vector<1x128x128xf32> to vector<128x128xf32>
    %cst_28 = arith.constant dense<0.000000e+00> : vector<16x128xf32>
    %23 = tpu.matmul %20, %22, %cst_28 {dimension_numbers = #tpu.dot_dimension_numbers<[1], [0], [0], [1], [0, 0, 1, 1], [], []>} : vector<16x128xf32>, vector<128x128xf32>, vector<16x128xf32> -> vector<16x128xf32>
    %24 = arith.addf %19, %23 : vector<16x128xf32>
    %cst_29 = arith.constant 0.000000e+00 : f32
    %25 = vector.broadcast %cst_29 : f32 to vector<16x128xf32>
    %26 = arith.maximumf %24, %25 : vector<16x128xf32>
    %c1_30 = arith.constant 1 : index
    %c0_31 = arith.constant 0 : index
    %27 = vector.load %arg8[%c1_30, %c0_31] : memref<18x128xf32, #tpu.memory_space<vmem>>, vector<16x128xf32>
    tpu.vector_store %arg8[%c1_30, %c0_31], %26 {strides = array<i32>} : memref<18x128xf32, #tpu.memory_space<vmem>>, vector<16x128xf32>,
    %c0_32 = arith.constant 0 : index
    %c0_33 = arith.constant 0 : index
    %28 = vector.load %arg5[%c0_32, %c0_33] : memref<1x128xf32, #tpu.memory_space<vmem>>, vector<1x128xf32>
    %29 = vector.broadcast %28 : vector<1x128xf32> to vector<16x128xf32>
    %30 = arith.addf %29, %6 : vector<16x128xf32>
    %c0_34 = arith.constant 0 : index
    %c0_35 = arith.constant 0 : index
    %31 = vector.load %arg8[%c0_34, %c0_35] : memref<18x128xf32, #tpu.memory_space<vmem>>, vector<16x128xf32>
    %c0_36 = arith.constant 0 : index
    %c0_37 = arith.constant 0 : index
    %c0_38 = arith.constant 0 : index
    %32 = vector.load %arg4[%c0_36, %c0_37, %c0_38] : memref<3x128x128xf32, #tpu.memory_space<vmem>>, vector<1x128x128xf32>
    %33 = vector.shape_cast %32 : vector<1x128x128xf32> to vector<128x128xf32>
    %cst_39 = arith.constant dense<0.000000e+00> : vector<16x128xf32>
    %34 = tpu.matmul %31, %33, %cst_39 {dimension_numbers = #tpu.dot_dimension_numbers<[1], [0], [0], [1], [0, 0, 1, 1], [], []>} : vector<16x128xf32>, vector<128x128xf32>, vector<16x128xf32> -> vector<16x128xf32>
    %35 = arith.addf %30, %34 : vector<16x128xf32>
    %c1_40 = arith.constant 1 : index
    %c0_41 = arith.constant 0 : index
    %36 = vector.load %arg8[%c1_40, %c0_41] : memref<18x128xf32, #tpu.memory_space<vmem>>, vector<16x128xf32>
    %c1_42 = arith.constant 1 : index
    %c0_43 = arith.constant 0 : index
    %c0_44 = arith.constant 0 : index
    %37 = vector.load %arg4[%c1_42, %c0_43, %c0_44] : memref<3x128x128xf32, #tpu.memory_space<vmem>>, vector<1x128x128xf32>
    %38 = vector.shape_cast %37 : vector<1x128x128xf32> to vector<128x128xf32>
    %cst_45 = arith.constant dense<0.000000e+00> : vector<16x128xf32>
    %39 = tpu.matmul %36, %38, %cst_45 {dimension_numbers = #tpu.dot_dimension_numbers<[1], [0], [0], [1], [0, 0, 1, 1], [], []>} : vector<16x128xf32>, vector<128x128xf32>, vector<16x128xf32> -> vector<16x128xf32>
    %40 = arith.addf %35, %39 : vector<16x128xf32>
    %c2_46 = arith.constant 2 : index
    %c0_47 = arith.constant 0 : index
    %41 = vector.load %arg8[%c2_46, %c0_47] : memref<18x128xf32, #tpu.memory_space<vmem>>, vector<16x128xf32>
    %c2_48 = arith.constant 2 : index
    %c0_49 = arith.constant 0 : index
    %c0_50 = arith.constant 0 : index
    %42 = vector.load %arg4[%c2_48, %c0_49, %c0_50] : memref<3x128x128xf32, #tpu.memory_space<vmem>>, vector<1x128x128xf32>
    %43 = vector.shape_cast %42 : vector<1x128x128xf32> to vector<128x128xf32>
    %cst_51 = arith.constant dense<0.000000e+00> : vector<16x128xf32>
    %44 = tpu.matmul %41, %43, %cst_51 {dimension_numbers = #tpu.dot_dimension_numbers<[1], [0], [0], [1], [0, 0, 1, 1], [], []>} : vector<16x128xf32>, vector<128x128xf32>, vector<16x128xf32> -> vector<16x128xf32>
    %45 = arith.addf %40, %44 : vector<16x128xf32>
    %cst_52 = arith.constant 0.000000e+00 : f32
    %46 = vector.broadcast %cst_52 : f32 to vector<16x128xf32>
    %47 = arith.maximumf %45, %46 : vector<16x128xf32>
    %c0_53 = arith.constant 0 : index
    %c0_54 = arith.constant 0 : index
    %c0_55 = arith.constant 0 : index
    %48 = vector.load %arg6[%c0_53, %c0_54, %c0_55] : memref<1x16x128xf32, #tpu.memory_space<vmem>>, vector<1x16x128xf32>
    %49 = vector.shape_cast %48 : vector<1x16x128xf32> to vector<16x128xf32>
    %50 = vector.shape_cast %47 : vector<16x128xf32> to vector<1x16x128xf32>
    tpu.vector_store %arg6[%c0_53, %c0_54, %c0_55], %50 {strides = array<i32>} : memref<1x16x128xf32, #tpu.memory_space<vmem>>, vector<1x16x128xf32>,
    return
  }
  func.func @transform_0(%arg0: i32) -> (i32, i32, i32) {
    %c0_i32 = arith.constant 0 : i32
    %c0_i32_0 = arith.constant 0 : i32
    %c0_i32_1 = arith.constant 0 : i32
    return %arg0, %c0_i32, %c0_i32_0 : i32, i32, i32
  }
  func.func @transform_1(%arg0: i32) -> (i32, i32, i32) {
    %c0_i32 = arith.constant 0 : i32
    %c0_i32_0 = arith.constant 0 : i32
    %c0_i32_1 = arith.constant 0 : i32
    %c0_i32_2 = arith.constant 0 : i32
    return %c0_i32, %c0_i32_0, %c0_i32_1 : i32, i32, i32
  }
  func.func @transform_2(%arg0: i32) -> (i32, i32) {
    %c0_i32 = arith.constant 0 : i32
    %c0_i32_0 = arith.constant 0 : i32
    %c0_i32_1 = arith.constant 0 : i32
    return %c0_i32, %c0_i32_0 : i32, i32
  }
  func.func @transform_3(%arg0: i32) -> (i32, i32, i32) {
    %c0_i32 = arith.constant 0 : i32
    %c0_i32_0 = arith.constant 0 : i32
    %c0_i32_1 = arith.constant 0 : i32
    %c0_i32_2 = arith.constant 0 : i32
    return %c0_i32, %c0_i32_0, %c0_i32_1 : i32, i32, i32
  }
  func.func @transform_4(%arg0: i32) -> (i32, i32) {
    %c0_i32 = arith.constant 0 : i32
    %c0_i32_0 = arith.constant 0 : i32
    %c0_i32_1 = arith.constant 0 : i32
    return %c0_i32, %c0_i32_0 : i32, i32
  }
  func.func @transform_5(%arg0: i32) -> (i32, i32, i32) {
    %c0_i32 = arith.constant 0 : i32
    %c0_i32_0 = arith.constant 0 : i32
    %c0_i32_1 = arith.constant 0 : i32
    return %arg0, %c0_i32, %c0_i32_0 : i32, i32, i32
  }
}

</mosaic_0001>

<bundles_post_ra>
// kernel: tile.13
= control target key start
LH: loop header
LB: loop body
LE: loop exit
PB: predicated region body
PF: predicated region fallthrough
CT: control target
= control target key end

     0   :  { %s28_s0 = inlined_call_operand.vmem [shape: f32[8], index: 0, kind: input, shape index: {}]   ;;  %s29_s1 = inlined_call_operand.vmem [shape: f32[16,8], index: 1, kind: output, shape index: {}]  }
   0x1   :  { %v4_v0 = vld [vmem:[%s28_s0] ss:$0 sm:$0xff] }
   0x2   :  { %5 = vst [vmem:[%s29_s1] sm:$0xff] %v4_v0  ;;  %8 = vst [vmem:[%s29_s1 + $0x8] sm:$0xff] %v4_v0 }

// kernel: tile.14
= control target key start
LH: loop header
LB: loop body
LE: loop exit
PB: predicated region body
PF: predicated region fallthrough
CT: control target
= control target key end

     0   :  { %s131_s10 = smov 120   ;;  %s132_s11 = smov 104   ;;  %vm3_vm0 = vcmask 64512   ;;  %vm9_vm1 = vcmask 1048512   ;;  %vm15_vm2 = vcmask 982912   ;;  %vm21_vm3 = vcmask 917312   ;;  %s207_s0 = inlined_call_operand.vmem [shape: f32[16,8], index: 0, kind: input, shape index: {}]   ;;  %s208_s1 = inlined_call_operand.vmem [shape: f32[1,128], index: 1, kind: output, shape index: {}]  }
   0x1   :  { %v101_v0 = vld [vmem:[%s207_s0 + $0xf] sm:$0x1]   ;;  %v103_v1 = vld [vmem:[%s207_s0 + $0xd] sm:$0x1]   ;;  %v102_v2 = vld [vmem:[%s207_s0 + $0xe] sm:$0x1]  }
   0x2   :  { %7 = vrot.lane.b32.xlu0 %v101_v0, %s131_s10  ;;  %19 = vrot.lane.b32.xlu1 %v103_v1, %s132_s11  ;;  %v104_v3 = vld [vmem:[%s207_s0 + $0xc] sm:$0x1]   ;;  %s133_s16 = smov 112   ;;  %s134_s17 = smov 96   ;;  %v105_v4 = vld [vmem:[%s207_s0 + $0xb] sm:$0x1]  }
   0x3   :  { %v106_v5 = vld [vmem:[%s207_s0 + $0xa] sm:$0x1]   ;;  %v2_v6 = vld [vmem:[%s207_s0] sm:$0x1]   ;;  %s135_s24 = smov 88   ;;  %s136_s25 = smov 80  }
   0x4   :  { %4 = vst.msk [vmem:[#allocation0] sm:$0x1] %vm3_vm0, %v2_v6   ;;  %v107_v7 = vld [vmem:[%s207_s0 + $0x9] sm:$0x1]   ;;  %v108_v8 = vld [vmem:[%s207_s0 + $0x8] sm:$0x1]  }
   0x5   :  { %s137_s30 = smov 72   ;;  %s138_s2 = smov 64   ;;  %v109_v9 = vld [vmem:[%s207_s0 + $0x7] sm:$0x1]   ;;  %v110_v10 = vld [vmem:[%s207_s0 + $0x6] sm:$0x1]  }
   0x6   :  { %13 = vrot.lane.b32.xlu0 %v102_v2, %s133_s16  ;;  %25 = vrot.lane.b32.xlu1 %v104_v3, %s134_s17  ;;  %s139_s7 = smov 56   ;;  %s140_s8 = smov 48   ;;  %v111_v11 = vld [vmem:[%s207_s0 + $0x5] sm:$0x1]   ;;  %v112_v12 = vld [vmem:[%s207_s0 + $0x4] sm:$0x1]  }
   0x7   :  { %s141_s13 = smov 40   ;;  %s142_s14 = smov 32   ;;  %v113_v13 = vld [vmem:[%s207_s0 + $0x3] sm:$0x1]   ;;  %v114_v14 = vld [vmem:[%s207_s0 + $0x2] sm:$0x1]  }
   0x8   :  { %s143_s19 = smov 24   ;;  %s144_s20 = smov 16   ;;  %v115_v15 = vld [vmem:[%s207_s0 + $0x1] sm:$0x1]   ;;  %vm27_vm4 = vcmask 851712   ;;  %vm33_vm5 = vcmask 786112  }
   0x9   :  { %s145_s0 = smov 8   ;;  %vm39_vm6 = vcmask 720512   ;;  %vm45_vm7 = vcmask 654912   ;;  %vm51_vm8 = vcmask 589312   ;;  %vm57_vm9 = vcmask 523712  }
   0xa   :  { %31 = vrot.lane.b32.xlu0 %v105_v4, %s135_s24  ;;  %37 = vrot.lane.b32.xlu1 %v106_v5, %s136_s25  ;;  %vm63_vm10 = vcmask 458112   ;;  %vm69_vm11 = vcmask 392512   ;;  %vm75_vm12 = vcmask 326912   ;;  %vm81_vm13 = vcmask 261312  }
   0xb   :  { %vm87_vm14 = vcmask 195712   ;;  %vm93_vm15 = vcmask 130112  }
   0xe   :  { %43 = vrot.lane.b32.xlu0 %v107_v7, %s137_s30  ;;  %49 = vrot.lane.b32.xlu1 %v108_v8, %s138_s2 }
  0x12   :  { %55 = vrot.lane.b32.xlu0 %v109_v9, %s139_s7  ;;  %61 = vrot.lane.b32.xlu1 %v110_v10, %s140_s8 }
  0x16   :  { %67 = vrot.lane.b32.xlu0 %v111_v11, %s141_s13  ;;  %73 = vrot.lane.b32.xlu1 %v112_v12, %s142_s14 }
  0x1a   :  { %79 = vrot.lane.b32.xlu0 %v113_v13, %s143_s19  ;;  %85 = vrot.lane.b32.xlu1 %v114_v14, %s144_s20 }
  0x1e   :  { %91 = vrot.lane.b32.xlu0 %v115_v15, %s145_s0 }
  0x74   :  { %v8_v16 = vpop.permute.xlu0 %7   ;;  %v20_v17 = vpop.permute.xlu1 %19  }
  0x75   :  { %10 = vst.msk [vmem:[#allocation0] sm:$0x1] %vm9_vm1, %v8_v16  }
  0x78   :  { %v14_v18 = vpop.permute.xlu0 %13   ;;  %v26_v19 = vpop.permute.xlu1 %25  }
  0x79   :  { %16 = vst.msk [vmem:[#allocation0] sm:$0x1] %vm15_vm2, %v14_v18  }
  0x7a   :  { %22 = vst.msk [vmem:[#allocation0] sm:$0x1] %vm21_vm3, %v20_v17  }
  0x7b   :  { %28 = vst.msk [vmem:[#allocation0] sm:$0x1] %vm27_vm4, %v26_v19  }
  0x7c   :  { %v32_v20 = vpop.permute.xlu0 %31   ;;  %v38_v21 = vpop.permute.xlu1 %37  }
  0x7d   :  { %34 = vst.msk [vmem:[#allocation0] sm:$0x1] %vm33_vm5, %v32_v20  }
  0x7e   :  { %40 = vst.msk [vmem:[#allocation0] sm:$0x1] %vm39_vm6, %v38_v21  }
  0x80   :  { %v44_v22 = vpop.permute.xlu0 %43   ;;  %v50_v23 = vpop.permute.xlu1 %49  }
  0x81   :  { %46 = vst.msk [vmem:[#allocation0] sm:$0x1] %vm45_vm7, %v44_v22  }
  0x82   :  { %52 = vst.msk [vmem:[#allocation0] sm:$0x1] %vm51_vm8, %v50_v23  }
  0x84   :  { %v56_v24 = vpop.permute.xlu0 %55   ;;  %v62_v25 = vpop.permute.xlu1 %61  }
  0x85   :  { %58 = vst.msk [vmem:[#allocation0] sm:$0x1] %vm57_vm9, %v56_v24  }
  0x86   :  { %64 = vst.msk [vmem:[#allocation0] sm:$0x1] %vm63_vm10, %v62_v25  }
  0x88   :  { %v68_v26 = vpop.permute.xlu0 %67   ;;  %v74_v27 = vpop.permute.xlu1 %73  }
  0x89   :  { %70 = vst.msk [vmem:[#allocation0] sm:$0x1] %vm69_vm11, %v68_v26  }
  0x8a   :  { %76 = vst.msk [vmem:[#allocation0] sm:$0x1] %vm75_vm12, %v74_v27  }
  0x8c   :  { %v80_v28 = vpop.permute.xlu0 %79   ;;  %v86_v29 = vpop.permute.xlu1 %85  }
  0x8d   :  { %82 = vst.msk [vmem:[#allocation0] sm:$0x1] %vm81_vm13, %v80_v28  }
  0x8e   :  { %88 = vst.msk [vmem:[#allocation0] sm:$0x1] %vm87_vm14, %v86_v29  }
  0x90   :  { %v92_v30 = vpop.permute.xlu0 %91  }
  0x91   :  { %94 = vst.msk [vmem:[#allocation0] sm:$0x1] %vm93_vm15, %v92_v30  }
  0x98   :  { %v98_v31 = vld [vmem:[#allocation0] sm:$0x1] }
  0x99   :  { %100 = vst [vmem:[%s208_s1] sm:$0x1] %v98_v31 }

// kernel: basic_block_pallas.1
= control target key start
LH: loop header
LB: loop body
LE: loop exit
PB: predicated region body
PF: predicated region fallthrough
CT: control target
= control target key end

     0   :  { %s1535_s18 = smov 0   ;;  %s1863_s0 = inlined_call_operand.vmem [shape: f32[2,16,128], index: 0, kind: input, shape index: {}]   ;;  %s1864_s1 = inlined_call_operand.vmem [shape: f32[3,128,128], index: 1, kind: input, shape index: {}]   ;;  %s1865_s2 = inlined_call_operand.vmem [shape: f32[1,128], index: 2, kind: input, shape index: {}]   ;;  %s1866_s3 = inlined_call_operand.vmem [shape: f32[3,128,128], index: 3, kind: input, shape index: {}]   ;;  %s1867_s4 = inlined_call_operand.vmem [shape: f32[1,128], index: 4, kind: input, shape index: {}]   ;;  %s1868_s5 = inlined_call_operand.vmem [shape: f32[2,16,128], index: 5, kind: output, shape index: {}]  }
   0x1 LB: > { %s886_s19 = sadd.s32 4294967295, %s1502_s18   ;;  %p890_p0 = scmp.ge.s32.totalorder %s1502_s18, 1  ;;  %s1502_s18 = sphi %s1535_s18, %s15_s18  }
   0x2   : > { %p187_p1 = scmp.lt.s32.totalorder %s1502_s18, 3 }
   0x4   : > { %p188_p2 = pnand %p890_p0, %p187_p1 }
   0x5   : > { %v236_v0 = vld [vmem:[%s1864_s1] sm:$0xff] (!%p188_p2)  ;;  %v237_v1 = vld [vmem:[%s1864_s1 + $0x8] sm:$0xff] (!%p188_p2)  ;;  %v238_v2 = vld [vmem:[%s1864_s1 + $0x10] sm:$0xff] (!%p188_p2)  ;;  %p215_p3 = scmp.lt.s32.totalorder (!%p188_p2), %s886_s19, 1  ;;  %v1504_v5 = vmov (!%p188_p2), 0.0  }
   0x6   : > { %191 = sbr.rel (%p188_p2) target bundleno = 612 (0x264), region = 40  ;;  %v1283_v3 = vpack.c.bf16 (!%p188_p2), %v237_v1, %v236_v0  ;;  %v239_v4 = vld [vmem:[%s1864_s1 + $0x18] sm:$0xff] (!%p188_p2)  ;;  %225 = vst [vmem:[#allocation2] sm:$0x1] (!%p188_p2), %v1504_v5  ;;  %226 = vst [vmem:[#allocation2 + $0x11] sm:$0x1] (!%p188_p2), %v1504_v5 }
   0x7   : > { %227 = vst [vmem:[#allocation3] sm:$0x1] (!%p188_p2), %v1504_v5  ;;  %228 = vst [vmem:[#allocation3 + $0x11] sm:$0x1] (!%p188_p2), %v1504_v5  ;;  %v1287_v6 = vpack.c.bf16 (!%p188_p2), %v239_v4, %v238_v2  ;;  %v240_v7 = vld [vmem:[%s1864_s1 + $0x20] sm:$0xff] (!%p188_p2)  ;;  %v241_v8 = vld [vmem:[%s1864_s1 + $0x28] sm:$0xff] (!%p188_p2) }
   0x8   : > { %1284 = vmatprep.subr.bf16.mxu0 (!%p188_p2), %v1283_v3  ;;  %v1291_v9 = vpack.c.bf16 (!%p188_p2), %v241_v8, %v240_v7  ;;  %v242_v10 = vld [vmem:[%s1864_s1 + $0x30] sm:$0xff] (!%p188_p2)  ;;  %v243_v11 = vld [vmem:[%s1864_s1 + $0x38] sm:$0xff] (!%p188_p2)  ;;  %v244_v15 = vld [vmem:[%s1864_s1 + $0x40] sm:$0xff] (!%p188_p2) }
   0x9   : > { %1286 = vmatpush3.bf16.msra.mxu0 (!%p188_p2), %v1283_v3  ;;  %v1295_v14 = vpack.c.bf16 (!%p188_p2), %v243_v11, %v242_v10  ;;  %v245_v16 = vld [vmem:[%s1864_s1 + $0x48] sm:$0xff] (!%p188_p2)  ;;  %v246_v18 = vld [vmem:[%s1864_s1 + $0x50] sm:$0xff] (!%p188_p2)  ;;  %v247_v19 = vld [vmem:[%s1864_s1 + $0x58] sm:$0xff] (!%p188_p2) }
   0xa   : > { %1288 = vmatprep.subr.bf16.mxu0 (!%p188_p2), %v1287_v6  ;;  %v1299_v17 = vpack.c.bf16 (!%p188_p2), %v245_v16, %v244_v15  ;;  %v1303_v21 = vpack.c.bf16 (!%p188_p2), %v247_v19, %v246_v18  ;;  %v248_v22 = vld [vmem:[%s1864_s1 + $0x60] sm:$0xff] (!%p188_p2)  ;;  %v249_v23 = vld [vmem:[%s1864_s1 + $0x68] sm:$0xff] (!%p188_p2)  ;;  %v544_v26 = vld [vmem:[%s1866_s3 + $0x10] sm:$0xff] (!%p188_p2) }
   0xb   : > { %v542_v24 = vld [vmem:[%s1866_s3] sm:$0xff] (!%p188_p2)  ;;  %v543_v25 = vld [vmem:[%s1866_s3 + $0x8] sm:$0xff] (!%p188_p2)  ;;  %v545_v28 = vld [vmem:[%s1866_s3 + $0x18] sm:$0xff] (!%p188_p2)  ;;  %v1307_v32 = vpack.c.bf16 (!%p188_p2), %v249_v23, %v248_v22 }
   0xc   : > { %v1379_v27 = vpack.c.bf16 (!%p188_p2), %v543_v25, %v542_v24  ;;  %v1383_v29 = vpack.c.bf16 (!%p188_p2), %v545_v28, %v544_v26  ;;  %v546_v30 = vld [vmem:[%s1866_s3 + $0x20] sm:$0xff] (!%p188_p2)  ;;  %v547_v31 = vld [vmem:[%s1866_s3 + $0x28] sm:$0xff] (!%p188_p2)  ;;  %v250_v33 = vld [vmem:[%s1864_s1 + $0x70] sm:$0xff] (!%p188_p2) }
   0xd   : > { %s1870_s19 = smov (!%p215_p3, %s886_s19), 1  ;;  %1290 = vmatpush3.bf16.msra.mxu0 %v1287_v6  ;;  %v251_v34 = vld [vmem:[%s1864_s1 + $0x78] sm:$0xff]  ;;  %v1387_v35 = vpack.c.bf16 %v547_v31, %v546_v30  ;;  %v548_v36 = vld [vmem:[%s1866_s3 + $0x30] sm:$0xff]  ;;  %v896_v39 = vld [vmem:[%s1864_s1 + $0x80] sm:$0xff] }
   0xe   : > { %s963_s7 = sshll.u32 %s1870_s19, 4  ;;  %1292 = vmatprep.subr.bf16.mxu0 %v1291_v9  ;;  %1380 = vmatprep.subr.bf16.mxu1 %v1379_v27  ;;  %v549_v37 = vld [vmem:[%s1866_s3 + $0x38] sm:$0xff]  ;;  %v1311_v38 = vpack.c.bf16 %v251_v34, %v250_v33  ;;  %v897_v40 = vld [vmem:[%s1864_s1 + $0x88] sm:$0xff]  ;;  %v550_v42 = vld [vmem:[%s1866_s3 + $0x40] sm:$0xff] }
   0xf   : > { %s219_s12 = scalar_lea.vmem %s1863_s0, %s963_s7  ;;  %1382 = vmatpush3.bf16.msra.mxu1 %v1379_v27  ;;  %v1391_v41 = vpack.c.bf16 %v549_v37, %v548_v36  ;;  %v551_v43 = vld [vmem:[%s1866_s3 + $0x48] sm:$0xff]  ;;  %v1315_v44 = vpack.c.bf16 %v897_v40, %v896_v39  ;;  %v898_v45 = vld [vmem:[%s1864_s1 + $0x90] sm:$0xff]  ;;  %v899_v46 = vld [vmem:[%s1864_s1 + $0x98] sm:$0xff]  ;;  %s224_s23 = scalar_lea.vmem %s1868_s5, %s963_s7 }
  0x10   : > { %v1575_v12 = vld [vmem:[%s219_s12] sm:$0xff]  ;;  %v1577_v13 = vld [vmem:[%s219_s12 + $0x8] sm:$0xff]  ;;  %1384 = vmatprep.subr.bf16.mxu1 %v1383_v29  ;;  %v1395_v47 = vpack.c.bf16 %v551_v43, %v550_v42  ;;  %v1319_v49 = vpack.c.bf16 %v899_v46, %v898_v45  ;;  %v902_v53 = vld [vmem:[%s1864_s1 + $0xb0] sm:$0xff] }
  0x11   : > { %231 = vst [vmem:[#allocation2 + $0x1] sm:$0xff] %v1575_v12  ;;  %232 = vst [vmem:[#allocation2 + $0x9] sm:$0xff] %v1577_v13  ;;  %1294 = vmatpush3.bf16.msra.mxu0 %v1291_v9  ;;  %v900_v50 = vld [vmem:[%s1864_s1 + $0xa0] sm:$0xff]  ;;  %v901_v51 = vld [vmem:[%s1864_s1 + $0xa8] sm:$0xff] }
  0x12   : > { %1296 = vmatprep.subr.bf16.mxu0 %v1295_v14  ;;  %v1323_v52 = vpack.c.bf16 %v901_v51, %v900_v50  ;;  %v903_v54 = vld [vmem:[%s1864_s1 + $0xb8] sm:$0xff]  ;;  %v904_v56 = vld [vmem:[%s1864_s1 + $0xc0] sm:$0xff]  ;;  %v905_v57 = vld [vmem:[%s1864_s1 + $0xc8] sm:$0xff] }
  0x13   : > { %1386 = vmatpush3.bf16.msra.mxu1 %v1383_v29  ;;  %v1327_v55 = vpack.c.bf16 %v903_v54, %v902_v53  ;;  %v1331_v58 = vpack.c.bf16 %v905_v57, %v904_v56  ;;  %v906_v59 = vld [vmem:[%s1864_s1 + $0xd0] sm:$0xff]  ;;  %v907_v60 = vld [vmem:[%s1864_s1 + $0xd8] sm:$0xff]  ;;  %v908_v62 = vld [vmem:[%s1864_s1 + $0xe0] sm:$0xff] }
  0x14   : > { %1388 = vmatprep.subr.bf16.mxu1 %v1387_v35  ;;  %v1335_v61 = vpack.c.bf16 %v907_v60, %v906_v59  ;;  %v909_v63 = vld [vmem:[%s1864_s1 + $0xe8] sm:$0xff]  ;;  %v910_v1 = vld [vmem:[%s1864_s1 + $0xf0] sm:$0xff]  ;;  %v911_v2 = vld [vmem:[%s1864_s1 + $0xf8] sm:$0xff] }
  0x15   : > { %1298 = vmatpush3.bf16.msra.mxu0 %v1295_v14  ;;  %v1339_v0 = vpack.c.bf16 %v909_v63, %v908_v62  ;;  %v1343_v3 = vpack.c.bf16 %v911_v2, %v910_v1  ;;  %v912_v4 = vld [vmem:[%s1864_s1 + $0x100] sm:$0xff]  ;;  %v913_v5 = vld [vmem:[%s1864_s1 + $0x108] sm:$0xff]  ;;  %v914_v7 = vld [vmem:[%s1864_s1 + $0x110] sm:$0xff] }
  0x16   : > { %1300 = vmatprep.subr.bf16.mxu0 %v1299_v17  ;;  %v1347_v6 = vpack.c.bf16 %v913_v5, %v912_v4  ;;  %v915_v8 = vld [vmem:[%s1864_s1 + $0x118] sm:$0xff]  ;;  %v916_v11 = vld [vmem:[%s1864_s1 + $0x120] sm:$0xff]  ;;  %v917_v14 = vld [vmem:[%s1864_s1 + $0x128] sm:$0xff] }
  0x17   : > { %1390 = vmatpush3.bf16.msra.mxu1 %v1387_v35  ;;  %v1351_v9 = vpack.c.bf16 %v915_v8, %v914_v7  ;;  %v1355_v15 = vpack.c.bf16 %v917_v14, %v916_v11  ;;  %v918_v16 = vld [vmem:[%s1864_s1 + $0x130] sm:$0xff]  ;;  %v920_v19 = vld [vmem:[%s1864_s1 + $0x140] sm:$0xff]  ;;  %v923_v23 = vld [vmem:[%s1864_s1 + $0x158] sm:$0xff] }
  0x18   : > { %v234_v20 = vld [vmem:[#allocation2] sm:$0xff]  ;;  %1392 = vmatprep.subr.bf16.mxu1 %v1391_v41  ;;  %v235_v48 = vld [vmem:[#allocation2 + $0x8] sm:$0xff]  ;;  %v922_v22 = vld [vmem:[%s1864_s1 + $0x150] sm:$0xff] }
  0x19   : > { %1105 = vmatprep.mubr.f32.mxu0 %v234_v20  ;;  %1302 = vmatpush3.bf16.msra.mxu0 %v1299_v17  ;;  %v431_v10 = vld [vmem:[#allocation2 + $0x2] sm:$0xff]  ;;  %v919_v17 = vld [vmem:[%s1864_s1 + $0x138] sm:$0xff]  ;;  %v1367_v24 = vpack.c.bf16 %v923_v23, %v922_v22  ;;  %v926_v28 = vld [vmem:[%s1864_s1 + $0x170] sm:$0xff] }
  0x1a   : > { %1304 = vmatprep.subr.bf16.mxu0 %v1303_v21  ;;  %v1359_v18 = vpack.c.bf16 %v919_v17, %v918_v16  ;;  %v921_v20 = vld [vmem:[%s1864_s1 + $0x148] sm:$0xff]  ;;  %v924_v25 = vld [vmem:[%s1864_s1 + $0x160] sm:$0xff]  ;;  %v927_v29 = vld [vmem:[%s1864_s1 + $0x178] sm:$0xff] }
  0x1b   : > { %1394 = vmatpush3.bf16.msra.mxu1 %v1391_v41  ;;  %v925_v26 = vld [vmem:[%s1864_s1 + $0x168] sm:$0xff]  ;;  %v1375_v30 = vpack.c.bf16 %v927_v29, %v926_v28  ;;  %v553_v33 = vld [vmem:[%s1866_s3 + $0x58] sm:$0xff]  ;;  %v554_v35 = vld [vmem:[%s1866_s3 + $0x60] sm:$0xff] }
  0x1c   : > { %1396 = vmatprep.subr.bf16.mxu1 %v1395_v47  ;;  %v1371_v27 = vpack.c.bf16 %v925_v26, %v924_v25  ;;  %v432_v31 = vld [vmem:[#allocation2 + $0xa] sm:$0xff]  ;;  %v557_v39 = vld [vmem:[%s1866_s3 + $0x78] sm:$0xff]  ;;  %v929_v41 = vld [vmem:[%s1866_s3 + $0x80] sm:$0xff] }
  0x1d   : > { %1306 = vmatpush3.bf16.msra.mxu0 %v1303_v21  ;;  %v1363_v21 = vpack.c.bf16 %v921_v20, %v920_v19  ;;  %v555_v36 = vld [vmem:[%s1866_s3 + $0x68] sm:$0xff]  ;;  %v931_v51 = vld [vmem:[%s1866_s3 + $0x90] sm:$0xff]  ;;  %v933_v56 = vld [vmem:[%s1866_s3 + $0xa0] sm:$0xff] }
  0x1e   : > { %1308 = vmatprep.subr.bf16.mxu0 %v1307_v32  ;;  %v1403_v37 = vpack.c.bf16 %v555_v36, %v554_v35  ;;  %v930_v42 = vld [vmem:[%s1866_s3 + $0x88] sm:$0xff]  ;;  %v935_v59 = vld [vmem:[%s1866_s3 + $0xb0] sm:$0xff]  ;;  %v936_v60 = vld [vmem:[%s1866_s3 + $0xb8] sm:$0xff] }
  0x1f   : > { %1398 = vmatpush3.bf16.msra.mxu1 %v1395_v47  ;;  %v1411_v43 = vpack.c.bf16 %v930_v42, %v929_v41  ;;  %v934_v57 = vld [vmem:[%s1866_s3 + $0xa8] sm:$0xff]  ;;  %v937_v62 = vld [vmem:[%s1866_s3 + $0xc0] sm:$0xff]  ;;  %v939_v1 = vld [vmem:[%s1866_s3 + $0xd0] sm:$0xff] }
  0x20   : > { %v938_v63 = vld [vmem:[%s1866_s3 + $0xc8] sm:$0xff]  ;;  %v940_v2 = vld [vmem:[%s1866_s3 + $0xd8] sm:$0xff]  ;;  %v941_v4 = vld [vmem:[%s1866_s3 + $0xe0] sm:$0xff] }
  0x21   : > { %1310 = vmatpush3.bf16.msra.mxu0 %v1307_v32  ;;  %v552_v32 = vld [vmem:[%s1866_s3 + $0x50] sm:$0xff]  ;;  %v942_v5 = vld [vmem:[%s1866_s3 + $0xe8] sm:$0xff]  ;;  %v944_v8 = vld [vmem:[%s1866_s3 + $0xf8] sm:$0xff] }
  0x22   : > { %1312 = vmatprep.subr.bf16.mxu0 %v1311_v38  ;;  %v1399_v34 = vpack.c.bf16 %v553_v33, %v552_v32  ;;  %v943_v7 = vld [vmem:[%s1866_s3 + $0xf0] sm:$0xff]  ;;  %v946_v11 = vld [vmem:[%s1866_s3 + $0x108] sm:$0xff]  ;;  %v948_v16 = vld [vmem:[%s1866_s3 + $0x118] sm:$0xff] }
  0x23   : > { %v950_v19 = vld [vmem:[%s1866_s3 + $0x128] sm:$0xff]  ;;  %v951_v22 = vld [vmem:[%s1866_s3 + $0x130] sm:$0xff]  ;;  %v952_v23 = vld [vmem:[%s1866_s3 + $0x138] sm:$0xff] }
  0x24   : > { %1400 = vmatprep.subr.bf16.mxu1 %v1399_v34  ;;  %v953_v25 = vld [vmem:[%s1866_s3 + $0x140] sm:$0xff]  ;;  %v954_v26 = vld [vmem:[%s1866_s3 + $0x148] sm:$0xff]  ;;  %v955_v28 = vld [vmem:[%s1866_s3 + $0x150] sm:$0xff] }
  0x25   : > { %1314 = vmatpush3.bf16.msra.mxu0 %v1311_v38  ;;  %1402 = vmatpush3.bf16.msra.mxu1 %v1399_v34  ;;  %v556_v38 = vld [vmem:[%s1866_s3 + $0x70] sm:$0xff]  ;;  %v956_v29 = vld [vmem:[%s1866_s3 + $0x158] sm:$0xff]  ;;  %v958_v32 = vld [vmem:[%s1866_s3 + $0x168] sm:$0xff] }
  0x26   : > { %1316 = vmatprep.subr.bf16.mxu0 %v1315_v44  ;;  %1404 = vmatprep.subr.bf16.mxu1 %v1403_v37  ;;  %v1407_v40 = vpack.c.bf16 %v557_v39, %v556_v38  ;;  %v959_v34 = vld [vmem:[%s1866_s3 + $0x170] sm:$0xff]  ;;  %v960_v35 = vld [vmem:[%s1866_s3 + $0x178] sm:$0xff]  ;;  %v928_v38 = vld [vmem:[%s1867_s4] ss:$0 sm:$0xff] }
  0x27   : > { %v1471_v36 = vpack.c.bf16 %v960_v35, %v959_v34  ;;  %v539_v39 = vadd.f32 %v928_v38, %v1577_v13 }
  0x28   : > { %1106 = vmatmul.mubr.f32.vlgmr.msra.gmra.mrb[0].mxu0 %v235_v48 }
  0x29   : > { %1318 = vmatpush3.bf16.msra.mxu0 %v1315_v44  ;;  %1140 = vmatprep.mubr.f32.mxu0 %v1575_v12  ;;  %v895_v44 = vld [vmem:[%s1865_s2] ss:$0 sm:$0xff] }
  0x2a   : > { %1320 = vmatprep.subr.bf16.mxu0 %v1319_v49  ;;  %1406 = vmatpush3.bf16.msra.mxu1 %v1403_v37 }
  0x2b   : > { %1408 = vmatprep.subr.bf16.mxu1 %v1407_v40 }
  0x2d   : > { %1322 = vmatpush3.bf16.msra.mxu0 %v1319_v49 }
  0x2e   : > { %1324 = vmatprep.subr.bf16.mxu0 %v1323_v52  ;;  %1410 = vmatpush3.bf16.msra.mxu1 %v1407_v40  ;;  %v538_v40 = vadd.f32 %v928_v38, %v1575_v12 }
  0x2f   : > { %1412 = vmatprep.subr.bf16.mxu1 %v1411_v43 }
  0x31   : > { %1326 = vmatpush3.bf16.msra.mxu0 %v1323_v52  ;;  %v932_v52 = vld [vmem:[%s1866_s3 + $0x98] sm:$0xff] }
  0x32   : > { %1328 = vmatprep.subr.bf16.mxu0 %v1327_v55 }
  0x35   : > { %1330 = vmatpush3.bf16.msra.mxu0 %v1327_v55  ;;  %v1415_v55 = vpack.c.bf16 %v932_v52, %v931_v51 }
  0x36   : > { %1332 = vmatprep.subr.bf16.mxu0 %v1331_v58 }
  0x39   : > { %1334 = vmatpush3.bf16.msra.mxu0 %v1331_v58  ;;  %v1419_v58 = vpack.c.bf16 %v934_v57, %v933_v56 }
  0x3a   : > { %1336 = vmatprep.subr.bf16.mxu0 %v1335_v61 }
  0x3d   : > { %1338 = vmatpush3.bf16.msra.mxu0 %v1335_v61  ;;  %v1423_v61 = vpack.c.bf16 %v936_v60, %v935_v59 }
  0x3e   : > { %1340 = vmatprep.subr.bf16.mxu0 %v1339_v0 }
  0x41   : > { %1342 = vmatpush3.bf16.msra.mxu0 %v1339_v0  ;;  %v1427_v0 = vpack.c.bf16 %v938_v63, %v937_v62 }
  0x42   : > { %1344 = vmatprep.subr.bf16.mxu0 %v1343_v3 }
  0x45   : > { %1346 = vmatpush3.bf16.msra.mxu0 %v1343_v3  ;;  %v1431_v3 = vpack.c.bf16 %v940_v2, %v939_v1 }
  0x46   : > { %1348 = vmatprep.subr.bf16.mxu0 %v1347_v6 }
  0x48   : > { %1141 = vmatmul.mubr.f32.vlgmr.msra.gmra.mrb[0].mxu0 %v1577_v13 }
  0x49   : > { %1350 = vmatpush3.bf16.msra.mxu0 %v1347_v6  ;;  %1175 = vmatprep.mubr.f32.mxu0 %v431_v10  ;;  %v1435_v6 = vpack.c.bf16 %v942_v5, %v941_v4  ;;  %v945_v10 = vld [vmem:[%s1866_s3 + $0x100] sm:$0xff] }
  0x4a   : > { %1352 = vmatprep.subr.bf16.mxu0 %v1351_v9  ;;  %v1443_v14 = vpack.c.bf16 %v946_v11, %v945_v10 }
  0x4d   : > { %1354 = vmatpush3.bf16.msra.mxu0 %v1351_v9  ;;  %v1439_v9 = vpack.c.bf16 %v944_v8, %v943_v7 }
  0x4e   : > { %1356 = vmatprep.subr.bf16.mxu0 %v1355_v15 }
  0x51   : > { %1358 = vmatpush3.bf16.msra.mxu0 %v1355_v15  ;;  %v947_v15 = vld [vmem:[%s1866_s3 + $0x110] sm:$0xff] }
  0x52   : > { %1360 = vmatprep.subr.bf16.mxu0 %v1359_v18  ;;  %v1447_v17 = vpack.c.bf16 %v948_v16, %v947_v15 }
  0x55   : > { %1362 = vmatpush3.bf16.msra.mxu0 %v1359_v18  ;;  %v949_v18 = vld [vmem:[%s1866_s3 + $0x120] sm:$0xff] }
  0x56   : > { %1364 = vmatprep.subr.bf16.mxu0 %v1363_v21 }
  0x59   : > { %1366 = vmatpush3.bf16.msra.mxu0 %v1363_v21  ;;  %v1451_v21 = vpack.c.bf16 %v950_v19, %v949_v18 }
  0x5a   : > { %1368 = vmatprep.subr.bf16.mxu0 %v1367_v24 }
  0x5d   : > { %1370 = vmatpush3.bf16.msra.mxu0 %v1367_v24  ;;  %v1455_v24 = vpack.c.bf16 %v952_v23, %v951_v22 }
  0x5e   : > { %1372 = vmatprep.subr.bf16.mxu0 %v1371_v27 }
  0x61   : > { %1374 = vmatpush3.bf16.msra.mxu0 %v1371_v27  ;;  %v1459_v27 = vpack.c.bf16 %v954_v26, %v953_v25 }
  0x62   : > { %1376 = vmatprep.subr.bf16.mxu0 %v1375_v30 }
  0x65   : > { %1378 = vmatpush3.bf16.msra.mxu0 %v1375_v30  ;;  %v1463_v30 = vpack.c.bf16 %v956_v29, %v955_v28 }
  0x68   : > { %1176 = vmatmul.mubr.f32.vlgmr.msra.gmra.mrb[0].mxu0 %v432_v31  ;;  %v957_v31 = vld [vmem:[%s1866_s3 + $0x160] sm:$0xff] }
  0x69   : > { %v1467_v33 = vpack.c.bf16 %v958_v32, %v957_v31 }
 0x13b   : > { %v1177_v45 = vpop.f32.mrb[0].mxu0 }
 0x13c   : > { %v1475_v46 = vadd.f32 %v1177_v45, %v895_v44  ;;  %v516_v47 = vpop.f32.mrb[1].mxu0 }
 0x13d   : > { %v1476_v48 = vadd.f32 %v895_v44, %v516_v47 }
 0x13e   : > { %v528_v49 = vmax.f32 %v1475_v46, 0.0 }
 0x13f   : > { %v527_v50 = vmax.f32 %v1476_v48, 0.0 }
 0x140   : > { %530 = vst [vmem:[#allocation3 + $0x9] sm:$0xff] %v528_v49 }
 0x141   : > { %529 = vst [vmem:[#allocation3 + $0x1] sm:$0xff] %v527_v50 }
 0x147   : > { %v732_v37 = vld [vmem:[#allocation3 + $0xa] sm:$0xff] }
 0x148   : > { %v540_v53 = vld [vmem:[#allocation3] sm:$0xff]  ;;  %v541_v54 = vld [vmem:[#allocation3 + $0x8] sm:$0xff] }
 0x149   : > { %1210 = vmatprep.mubr.f32.mxu1 %v540_v53  ;;  %v731_v20 = vld [vmem:[#allocation3 + $0x2] sm:$0xff] }
 0x14a   : > { %1211 = vmatmul.mubr.f32.vlgmr.msra.gmra.mrb[0].mxu1 %v541_v54 }
 0x14b   : > { %1414 = vmatpush3.bf16.msra.mxu1 %v1411_v43  ;;  %1245 = vmatprep.mubr.f32.mxu1 %v527_v50 }
 0x14c   : > { %1416 = vmatprep.subr.bf16.mxu1 %v1415_v55 }
 0x14f   : > { %1418 = vmatpush3.bf16.msra.mxu1 %v1415_v55 }
 0x150   : > { %1420 = vmatprep.subr.bf16.mxu1 %v1419_v58 }
 0x153   : > { %1422 = vmatpush3.bf16.msra.mxu1 %v1419_v58 }
 0x154   : > { %1424 = vmatprep.subr.bf16.mxu1 %v1423_v61 }
 0x157   : > { %1426 = vmatpush3.bf16.msra.mxu1 %v1423_v61 }
 0x158   : > { %1428 = vmatprep.subr.bf16.mxu1 %v1427_v0 }
 0x15b   : > { %1430 = vmatpush3.bf16.msra.mxu1 %v1427_v0 }
 0x15c   : > { %1432 = vmatprep.subr.bf16.mxu1 %v1431_v3 }
 0x15f   : > { %1434 = vmatpush3.bf16.msra.mxu1 %v1431_v3 }
 0x160   : > { %1436 = vmatprep.subr.bf16.mxu1 %v1435_v6 }
 0x163   : > { %1438 = vmatpush3.bf16.msra.mxu1 %v1435_v6 }
 0x164   : > { %1440 = vmatprep.subr.bf16.mxu1 %v1439_v9 }
 0x167   : > { %1442 = vmatpush3.bf16.msra.mxu1 %v1439_v9 }
 0x168   : > { %1444 = vmatprep.subr.bf16.mxu1 %v1443_v14 }
 0x16a   : > { %1246 = vmatmul.mubr.f32.vlgmr.msra.gmra.mrb[0].mxu1 %v528_v49 }
 0x16b   : > { %1446 = vmatpush3.bf16.msra.mxu1 %v1443_v14  ;;  %1280 = vmatprep.mubr.f32.mxu1 %v731_v20 }
 0x16c   : > { %1448 = vmatprep.subr.bf16.mxu1 %v1447_v17 }
 0x16f   : > { %1450 = vmatpush3.bf16.msra.mxu1 %v1447_v17 }
 0x170   : > { %1452 = vmatprep.subr.bf16.mxu1 %v1451_v21 }
 0x173   : > { %1454 = vmatpush3.bf16.msra.mxu1 %v1451_v21 }
 0x174   : > { %1456 = vmatprep.subr.bf16.mxu1 %v1455_v24 }
 0x177   : > { %1458 = vmatpush3.bf16.msra.mxu1 %v1455_v24 }
 0x178   : > { %1460 = vmatprep.subr.bf16.mxu1 %v1459_v27 }
 0x17b   : > { %1462 = vmatpush3.bf16.msra.mxu1 %v1459_v27 }
 0x17c   : > { %1464 = vmatprep.subr.bf16.mxu1 %v1463_v30 }
 0x17f   : > { %1466 = vmatpush3.bf16.msra.mxu1 %v1463_v30 }
 0x180   : > { %1468 = vmatprep.subr.bf16.mxu1 %v1467_v33 }
 0x183   : > { %1470 = vmatpush3.bf16.msra.mxu1 %v1467_v33 }
 0x184   : > { %1472 = vmatprep.subr.bf16.mxu1 %v1471_v36 }
 0x187   : > { %1474 = vmatpush3.bf16.msra.mxu1 %v1471_v36 }
 0x18a   : > { %1281 = vmatmul.mubr.f32.vlgmr.msra.gmra.mrb[0].mxu1 %v732_v37 }
 0x25d   : > { %v1282_v41 = vpop.f32.mrb[0].mxu1 }
 0x25e   : > { %v1477_v42 = vadd.f32 %v1282_v41, %v539_v39  ;;  %v816_v43 = vpop.f32.mrb[1].mxu1 }
 0x25f   : > { %v1478_v44 = vadd.f32 %v816_v43, %v538_v40 }
 0x260   : > { %v828_v45 = vmax.f32 %v1477_v42, 0.0 }
 0x261   : > { %v827_v46 = vmax.f32 %v1478_v44, 0.0 }
 0x262   : > { %830 = vst [vmem:[%s224_s23 + $0x8] sm:$0xff] %v828_v45 }
 0x263   : > { %829 = vst [vmem:[%s224_s23] sm:$0xff] %v827_v46 }
 0x264 PF: > { %s15_s18 = sadd.s32 1, %s1502_s18  }
 0x265   : > { %p12_p4 = scmp.ge.s32.totalorder %s15_s18, 4  }
 0x267   :  { %14 = sbr.rel (!%p12_p4) target bundleno = 1 (0x1), region = 74 }

</bundles_post_ra>
